<compile_context>
chip_gen: v5e
topology: v5e:2x2
jax: 0.10.0
libtpu: 0.0.40
codegen_flags: <defaults>
</compile_context>

<pallas_src>
import functools

import jax
import jax.numpy as jnp
from jax.experimental import pallas as pl
from jax.experimental.pallas import tpu as pltpu

BN_EPS = 1e-5
F_IN = 13     # real input features
F_PAD = 16    # padded fc1 contraction dim (sublane-friendly, zero-padded)
H1 = 32
H2 = 64


def _hidden(x_ref, w1_ref, b1_ref, w2_ref, b2_ref):
    """fc1 -> ReLU -> fc2 -> ReLU for the current batch tile."""
    h1 = jnp.dot(x_ref[...], w1_ref[...], preferred_element_type=jnp.float32) + b1_ref[...]
    h1 = jnp.maximum(h1, 0.0)                                                  # (tile_b, H1)
    h2 = jnp.dot(h1, w2_ref[...], preferred_element_type=jnp.float32) + b2_ref[...]
    return jnp.maximum(h2, 0.0)                                                # (tile_b, H2)


def stats_kernel(x_ref, w1_ref, b1_ref, w2_ref, b2_ref, sum_ref, sumsq_ref,
                 *, true_b, tile_b):
    """Accumulate per-feature sum(h2) and sum(h2^2) across batch tiles."""
    i = pl.program_id(0)

    @pl.when(i == 0)
    def _():
        sum_ref[...] = jnp.zeros_like(sum_ref)
        sumsq_ref[...] = jnp.zeros_like(sumsq_ref)

    h2 = _hidden(x_ref, w1_ref, b1_ref, w2_ref, b2_ref)                        # (tile_b, H2)

    # Mask padded batch rows so they do not pollute the batch statistics.
    row = i * tile_b + jax.lax.broadcasted_iota(jnp.int32, (tile_b, 1), 0)
    valid = (row < true_b).astype(jnp.float32)                                 # (tile_b, 1)
    h2 = h2 * valid

    sum_ref[...] += jnp.sum(h2, axis=0, keepdims=True)                         # (1, H2)
    sumsq_ref[...] += jnp.sum(h2 * h2, axis=0, keepdims=True)                  # (1, H2)


def fwd_kernel(x_ref, w1_ref, b1_ref, w2_ref, b2_ref, gamma_ref, beta_ref,
               w3t_ref, b3_ref, sum_ref, sumsq_ref, o_ref, *, true_b):
    h2 = _hidden(x_ref, w1_ref, b1_ref, w2_ref, b2_ref)                        # (tile_b, H2)

    # Batch statistics from the accumulated sums (single pass: E[x^2] - mean^2),
    # normalized by the true (unpadded) batch size.
    inv_n = jnp.float32(1.0 / true_b)
    mean = sum_ref[...] * inv_n                                                # (1, H2)
    var = jnp.maximum(sumsq_ref[...] * inv_n - mean * mean, 0.0)               # (1, H2)
    scale = gamma_ref[...] * jax.lax.rsqrt(var + BN_EPS)                       # (1, H2)

    # Fold BatchNorm into fc3 (BN is affine, fc3 is linear):
    #   ((h2 - mean)*scale + beta) @ w3 + b3
    # = h2 @ (w3 * scale) + ((beta - mean*scale) @ w3 + b3)
    w3_eff = w3t_ref[...] * scale                                              # (1, H2)
    shift = (beta_ref[...] - mean * scale) * w3t_ref[...]                      # (1, H2)
    bias_eff = jnp.sum(shift, axis=1, keepdims=True) + b3_ref[...]             # (1, 1)

    # fc3 has N=1 -> keep it off the MXU: VPU multiply, XLU transpose, sublane
    # reduction; result is directly the lane-dense (1, tile_b) output row.
    r = h2 * w3_eff                                                            # (tile_b, H2)
    logits = jnp.sum(r.T, axis=0, keepdims=True) + bias_eff                    # (1, tile_b)

    # Sigmoid via tanh: single EUP transcendental, no VPU divide.
    o_ref[...] = 0.5 * jnp.tanh(0.5 * logits) + 0.5


def deepffnn_forward(x, params, *, tile_b=256):
    """x: (B, 13) float32. Returns (B, 1) float32.

    tile_b: batch tile; 256 suits v6e/v7x MXU (2x256x256); 128 is enough on v5e.
    """
    (w1, b1, w2, b2, gamma, beta, w3, b3) = params
    B = x.shape[0]
    g = pl.cdiv(B, tile_b)
    b_pad = g * tile_b

    # Zero-pad batch (to a tile multiple) and the fc1 contraction dim (13 -> 16).
    xp = jnp.zeros((b_pad, F_PAD), jnp.float32).at[:B, :F_IN].set(x)
    w1p = jnp.zeros((F_PAD, H1), jnp.float32).at[:F_IN, :].set(w1)
    w3t = w3.reshape(1, H2)                                # (64,1) -> row (1,64)

    def const(shape):
        # Full-array block with a constant index map: stays VMEM-resident across steps.
        return pl.BlockSpec(shape, lambda i: (0, 0))

    x_spec = pl.BlockSpec((tile_b, F_PAD), lambda i: (i, 0))

    # ---- pass 1: batch statistics of h2 -------------------------------------
    sum_h2, sumsq_h2 = pl.pallas_call(
        functools.partial(stats_kernel, true_b=B, tile_b=tile_b),
        out_shape=(jax.ShapeDtypeStruct((1, H2), jnp.float32),
                   jax.ShapeDtypeStruct((1, H2), jnp.float32)),
        grid=(g,),
        in_specs=[x_spec,
                  const((F_PAD, H1)), const((1, H1)),
                  const((H1, H2)), const((1, H2))],
        out_specs=(const((1, H2)), const((1, H2))),
        compiler_params=pltpu.CompilerParams(dimension_semantics=("arbitrary",)),
    )(xp, w1p, b1, w2, b2)

    # ---- pass 2: normalized forward with BN folded into fc3 -----------------
    rows = pl.pallas_call(
        functools.partial(fwd_kernel, true_b=B),
        out_shape=jax.ShapeDtypeStruct((g, tile_b), jnp.float32),   # lane-dense output
        grid=(g,),
        in_specs=[x_spec,
                  const((F_PAD, H1)), const((1, H1)),
                  const((H1, H2)), const((1, H2)),
                  const((1, H2)), const((1, H2)),
                  const((1, H2)), const((1, 1)),
                  const((1, H2)), const((1, H2))],
        out_specs=pl.BlockSpec((1, tile_b), lambda i: (i, 0)),
        compiler_params=pltpu.CompilerParams(dimension_semantics=("parallel",)),
    )(xp, w1p, b1, w2, b2, gamma, beta, w3t, b3, sum_h2, sumsq_h2)

    # Wrapper-side layout plumbing: lane-dense (g, tile_b) -> (B, 1).
    return rows.reshape(-1)[:B].reshape(B, 1)


def init_params(key):
    """Deterministic synthetic init. Linear weights stored as (in, out)."""
    k1, k2, k3 = jax.random.split(key, 3)

    def lin_init(k, fan_in, fan_out):
        bound = 1.0 / jnp.sqrt(jnp.float32(fan_in))
        kw, kb = jax.random.split(k)
        w = jax.random.uniform(kw, (fan_in, fan_out), jnp.float32, -bound, bound)
        b = jax.random.uniform(kb, (1, fan_out), jnp.float32, -bound, bound)
        return w, b

    w1, b1 = lin_init(k1, F_IN, H1)
    w2, b2 = lin_init(k2, H1, H2)
    w3, b3 = lin_init(k3, H2, 1)
    gamma = jnp.ones((1, H2), jnp.float32)    # BatchNorm1d weight init
    beta = jnp.zeros((1, H2), jnp.float32)    # BatchNorm1d bias init
    return (w1, b1, w2, b2, gamma, beta, w3, b3)


def deepffnn_ref(x, params):
    """Pure-JAX reference (PyTorch semantics, training-mode BatchNorm)."""
    (w1, b1, w2, b2, gamma, beta, w3, b3) = params
    h1 = jnp.maximum(x @ w1 + b1, 0.0)
    h2 = jnp.maximum(h1 @ w2 + b2, 0.0)
    mean = jnp.mean(h2, axis=0, keepdims=True)
    var = jnp.mean((h2 - mean) ** 2, axis=0, keepdims=True)     # biased, as PyTorch uses for normalization
    hbn = (h2 - mean) / jnp.sqrt(var + BN_EPS) * gamma + beta
    return jax.nn.sigmoid(hbn @ w3 + b3)
# TODO(synk): BatchNorm1d running_mean/running_var momentum updates (training side-effect
# buffers) are not materialized; only the forward output is produced.


if __name__ == "__main__":
    key = jax.random.PRNGKey(0)
    kx, kp = jax.random.split(key)

    B = 8  # batch size (>1 so batch-norm training statistics are well defined)
    x = jax.random.normal(kx, (B, F_IN), jnp.float32)
    params = init_params(kp)

    out = deepffnn_forward(x, params)
    out = jax.block_until_ready(out)

    ref = deepffnn_ref(x, params)
    assert out.shape == (B, 1)
    assert jnp.allclose(out, ref, atol=1e-5, rtol=1e-5), (
        f"max abs err = {jnp.max(jnp.abs(out - ref))}")

    print("KERNEL_OK")
</pallas_src>

<mosaic_0001>
module attributes {stable_mosaic.version = 11 : i64} {
  func.func @stats_kernel(%arg0: i32, %arg1: memref<256x16xf32, #tpu.memory_space<vmem>>, %arg2: memref<16x32xf32, #tpu.memory_space<vmem>>, %arg3: memref<1x32xf32, #tpu.memory_space<vmem>>, %arg4: memref<32x64xf32, #tpu.memory_space<vmem>>, %arg5: memref<1x64xf32, #tpu.memory_space<vmem>>, %arg6: memref<1x64xf32, #tpu.memory_space<vmem>>, %arg7: memref<1x64xf32, #tpu.memory_space<vmem>>) attributes {dimension_semantics = [#tpu.dimension_semantics<arbitrary>], iteration_bounds = array<i64: 1>, scalar_prefetch = 0 : i64, scratch_operands = 0 : i64, tpu.core_type = #tpu.core_type<tc>, window_params = [{transform_indices = @transform_0, window_bounds = array<i64: 256, 16>}, {pipeline_mode = #tpu.pipeline_mode<synchronous>, transform_indices = @transform_1, window_bounds = array<i64: 16, 32>}, {pipeline_mode = #tpu.pipeline_mode<synchronous>, transform_indices = @transform_2, window_bounds = array<i64: 1, 32>}, {pipeline_mode = #tpu.pipeline_mode<synchronous>, transform_indices = @transform_3, window_bounds = array<i64: 32, 64>}, {pipeline_mode = #tpu.pipeline_mode<synchronous>, transform_indices = @transform_4, window_bounds = array<i64: 1, 64>}, {pipeline_mode = #tpu.pipeline_mode<synchronous>, transform_indices = @transform_5, window_bounds = array<i64: 1, 64>}, {pipeline_mode = #tpu.pipeline_mode<synchronous>, transform_indices = @transform_6, window_bounds = array<i64: 1, 64>}]} {
    %c0_i32 = arith.constant 0 : i32
    %0 = arith.cmpi eq, %arg0, %c0_i32 : i32
    %1 = arith.extui %0 : i1 to i32
    %c0_i32_0 = arith.constant 0 : i32
    %2 = arith.cmpi ne, %1, %c0_i32_0 : i32
    scf.if %2 {
      %cst_23 = arith.constant 0.000000e+00 : f32
      %39 = vector.broadcast %cst_23 : f32 to vector<1x64xf32>
      %c0_24 = arith.constant 0 : index
      %c0_25 = arith.constant 0 : index
      %40 = vector.load %arg6[%c0_24, %c0_25] : memref<1x64xf32, #tpu.memory_space<vmem>>, vector<1x64xf32>
      tpu.vector_store %arg6[%c0_24, %c0_25], %39 {strides = array<i32>} : memref<1x64xf32, #tpu.memory_space<vmem>>, vector<1x64xf32>,
      %cst_26 = arith.constant 0.000000e+00 : f32
      %41 = vector.broadcast %cst_26 : f32 to vector<1x64xf32>
      %c0_27 = arith.constant 0 : index
      %c0_28 = arith.constant 0 : index
      %42 = vector.load %arg7[%c0_27, %c0_28] : memref<1x64xf32, #tpu.memory_space<vmem>>, vector<1x64xf32>
      tpu.vector_store %arg7[%c0_27, %c0_28], %41 {strides = array<i32>} : memref<1x64xf32, #tpu.memory_space<vmem>>, vector<1x64xf32>,
    } else {
    }
    %c0 = arith.constant 0 : index
    %c0_1 = arith.constant 0 : index
    %3 = vector.load %arg1[%c0, %c0_1] : memref<256x16xf32, #tpu.memory_space<vmem>>, vector<256x16xf32>
    %c0_2 = arith.constant 0 : index
    %c0_3 = arith.constant 0 : index
    %4 = vector.load %arg2[%c0_2, %c0_3] : memref<16x32xf32, #tpu.memory_space<vmem>>, vector<16x32xf32>
    %cst = arith.constant dense<0.000000e+00> : vector<256x32xf32>
    %5 = tpu.matmul %3, %4, %cst {dimension_numbers = #tpu.dot_dimension_numbers<[1], [0], [0], [1], [0, 0, 1, 1], [], []>} : vector<256x16xf32>, vector<16x32xf32>, vector<256x32xf32> -> vector<256x32xf32>
    %c0_4 = arith.constant 0 : index
    %c0_5 = arith.constant 0 : index
    %6 = vector.load %arg3[%c0_4, %c0_5] : memref<1x32xf32, #tpu.memory_space<vmem>>, vector<1x32xf32>
    %7 = vector.broadcast %6 : vector<1x32xf32> to vector<256x32xf32>
    %8 = arith.addf %5, %7 : vector<256x32xf32>
    %cst_6 = arith.constant 0.000000e+00 : f32
    %9 = vector.broadcast %cst_6 : f32 to vector<256x32xf32>
    %10 = arith.maximumf %8, %9 : vector<256x32xf32>
    %c0_7 = arith.constant 0 : index
    %c0_8 = arith.constant 0 : index
    %11 = vector.load %arg4[%c0_7, %c0_8] : memref<32x64xf32, #tpu.memory_space<vmem>>, vector<32x64xf32>
    %cst_9 = arith.constant dense<0.000000e+00> : vector<256x64xf32>
    %12 = tpu.matmul %10, %11, %cst_9 {dimension_numbers = #tpu.dot_dimension_numbers<[1], [0], [0], [1], [0, 0, 1, 1], [], []>} : vector<256x32xf32>, vector<32x64xf32>, vector<256x64xf32> -> vector<256x64xf32>
    %c0_10 = arith.constant 0 : index
    %c0_11 = arith.constant 0 : index
    %13 = vector.load %arg5[%c0_10, %c0_11] : memref<1x64xf32, #tpu.memory_space<vmem>>, vector<1x64xf32>
    %14 = vector.broadcast %13 : vector<1x64xf32> to vector<256x64xf32>
    %15 = arith.addf %12, %14 : vector<256x64xf32>
    %cst_12 = arith.constant 0.000000e+00 : f32
    %16 = vector.broadcast %cst_12 : f32 to vector<256x64xf32>
    %17 = arith.maximumf %15, %16 : vector<256x64xf32>
    %c256_i32 = arith.constant 256 : i32
    %18 = arith.muli %arg0, %c256_i32 : i32
    %19 = tpu.iota {dimensions = array<i32: 0>} : vector<256x1xi32>
    %20 = vector.broadcast %18 : i32 to vector<256x1xi32>
    %21 = arith.addi %20, %19 : vector<256x1xi32>
    %c8_i32 = arith.constant 8 : i32
    %22 = vector.broadcast %c8_i32 : i32 to vector<256x1xi32>
    %23 = arith.cmpi slt, %21, %22 : vector<256x1xi32>
    %24 = arith.extui %23 : vector<256x1xi1> to vector<256x1xi32>
    %25 = arith.sitofp %24 : vector<256x1xi32> to vector<256x1xf32>
    %26 = vector.broadcast %25 : vector<256x1xf32> to vector<256x64xf32>
    %27 = arith.mulf %17, %26 : vector<256x64xf32>
    %c0_13 = arith.constant 0 : index
    %c0_14 = arith.constant 0 : index
    %28 = vector.load %arg6[%c0_13, %c0_14] : memref<1x64xf32, #tpu.memory_space<vmem>>, vector<1x64xf32>
    %cst_15 = arith.constant dense<0.000000e+00> : vector<64xf32>
    %29 = vector.multi_reduction <add>, %27, %cst_15 [0] : vector<256x64xf32> to vector<64xf32>
    %30 = vector.shape_cast %29 : vector<64xf32> to vector<1x64xf32>
    %31 = arith.addf %28, %30 : vector<1x64xf32>
    %c0_16 = arith.constant 0 : index
    %c0_17 = arith.constant 0 : index
    %32 = vector.load %arg6[%c0_16, %c0_17] : memref<1x64xf32, #tpu.memory_space<vmem>>, vector<1x64xf32>
    tpu.vector_store %arg6[%c0_16, %c0_17], %31 {strides = array<i32>} : memref<1x64xf32, #tpu.memory_space<vmem>>, vector<1x64xf32>,
    %c0_18 = arith.constant 0 : index
    %c0_19 = arith.constant 0 : index
    %33 = vector.load %arg7[%c0_18, %c0_19] : memref<1x64xf32, #tpu.memory_space<vmem>>, vector<1x64xf32>
    %34 = arith.mulf %27, %27 : vector<256x64xf32>
    %cst_20 = arith.constant dense<0.000000e+00> : vector<64xf32>
    %35 = vector.multi_reduction <add>, %34, %cst_20 [0] : vector<256x64xf32> to vector<64xf32>
    %36 = vector.shape_cast %35 : vector<64xf32> to vector<1x64xf32>
    %37 = arith.addf %33, %36 : vector<1x64xf32>
    %c0_21 = arith.constant 0 : index
    %c0_22 = arith.constant 0 : index
    %38 = vector.load %arg7[%c0_21, %c0_22] : memref<1x64xf32, #tpu.memory_space<vmem>>, vector<1x64xf32>
    tpu.vector_store %arg7[%c0_21, %c0_22], %37 {strides = array<i32>} : memref<1x64xf32, #tpu.memory_space<vmem>>, vector<1x64xf32>,
    return
  }
  func.func @transform_0(%arg0: i32) -> (i32, i32) {
    %c0_i32 = arith.constant 0 : i32
    %c0_i32_0 = arith.constant 0 : i32
    return %arg0, %c0_i32 : i32, i32
  }
  func.func @transform_1(%arg0: i32) -> (i32, i32) {
    %c0_i32 = arith.constant 0 : i32
    %c0_i32_0 = arith.constant 0 : i32
    %c0_i32_1 = arith.constant 0 : i32
    return %c0_i32, %c0_i32_0 : i32, i32
  }
  func.func @transform_2(%arg0: i32) -> (i32, i32) {
    %c0_i32 = arith.constant 0 : i32
    %c0_i32_0 = arith.constant 0 : i32
    %c0_i32_1 = arith.constant 0 : i32
    return %c0_i32, %c0_i32_0 : i32, i32
  }
  func.func @transform_3(%arg0: i32) -> (i32, i32) {
    %c0_i32 = arith.constant 0 : i32
    %c0_i32_0 = arith.constant 0 : i32
    %c0_i32_1 = arith.constant 0 : i32
    return %c0_i32, %c0_i32_0 : i32, i32
  }
  func.func @transform_4(%arg0: i32) -> (i32, i32) {
    %c0_i32 = arith.constant 0 : i32
    %c0_i32_0 = arith.constant 0 : i32
    %c0_i32_1 = arith.constant 0 : i32
    return %c0_i32, %c0_i32_0 : i32, i32
  }
  func.func @transform_5(%arg0: i32) -> (i32, i32) {
    %c0_i32 = arith.constant 0 : i32
    %c0_i32_0 = arith.constant 0 : i32
    %c0_i32_1 = arith.constant 0 : i32
    return %c0_i32, %c0_i32_0 : i32, i32
  }
  func.func @transform_6(%arg0: i32) -> (i32, i32) {
    %c0_i32 = arith.constant 0 : i32
    %c0_i32_0 = arith.constant 0 : i32
    %c0_i32_1 = arith.constant 0 : i32
    return %c0_i32, %c0_i32_0 : i32, i32
  }
}

</mosaic_0001>

<bundles_post_ra>
// kernel: tpu_custom_call.1
= control target key start
LH: loop header
LB: loop body
LE: loop exit
PB: predicated region body
PF: predicated region fallthrough
CT: control target
= control target key end

     0   :  { %12 = vsyncpa [#allocation3], 0  ;;  %vm69_vm0 = vcmask 130048   ;;  %s1463_s0 = inlined_call_operand.vmem [shape: f32[256,16], index: 0, kind: input, shape index: {}]   ;;  %s1464_s1 = inlined_call_operand.vmem [shape: f32[16,32], index: 1, kind: input, shape index: {}]   ;;  %s1465_s2 = inlined_call_operand.vmem [shape: f32[1,32], index: 2, kind: input, shape index: {}]   ;;  %s1466_s3 = inlined_call_operand.vmem [shape: f32[32,64], index: 3, kind: input, shape index: {}]   ;;  %s1467_s4 = inlined_call_operand.vmem [shape: f32[1,64], index: 4, kind: input, shape index: {}]   ;;  %s1468_s5 = inlined_call_operand.hbm [shape: f32[1,64], index: 5, kind: output, shape index: {0}]   ;;  %s1469_s6 = inlined_call_operand.hbm [shape: f32[1,64], index: 6, kind: output, shape index: {1}]  }
   0x1   :  { %v64_v0 = vld [vmem:[%s1464_s1 + $0x8] sm:$0xff]  ;;  %v63_v1 = vld [vmem:[%s1464_s1] sm:$0xff] }
   0x2   :  { %180 = vmatpush.msra.mxu0 %v64_v0  ;;  %v31_v2 = vld [vmem:[%s1463_s0] sm:$0xff]  ;;  %1030 = vmatpush.msra.mxu3 %v64_v0 }
   0x4   :  { %181 = vmatpush.msra.mxu0 %v63_v1  ;;  %1031 = vmatpush.msra.mxu3 %v63_v1 }
   0x5   :  { %13 = vsyncpa [#allocation5], 0  ;;  %966 = vmatmul.msk.f32.vlgmr.msra.gmra.mxu0 %vm69_vm0, %v31_v2  ;;  %v32_v3 = vld [vmem:[%s1463_s0 + $0x8] sm:$0xff]  ;;  %v33_v4 = vld [vmem:[%s1463_s0 + $0x10] sm:$0xff]  ;;  %vm319_vm1 = vcmask 261120   ;;  %vm757_vm2 = vcmask 523264  }
   0x6   :  { %v34_v5 = vld [vmem:[%s1463_s0 + $0x18] sm:$0xff]  ;;  %v35_v6 = vld [vmem:[%s1463_s0 + $0x20] sm:$0xff]  ;;  %v36_v7 = vld [vmem:[%s1463_s0 + $0x28] sm:$0xff]  ;;  %vm28_vm3 = vcmask 516096   ;;  %s941_s25 = sshll.u32 %s1468_s5, 4  ;;  %s1095_s26 = smov [#allocation4]   ;;  %s942_s25 = int_to_ptr.hbm [resolvable:$true] %s941_s25 }
   0x7   :  { %v37_v8 = vld [vmem:[%s1463_s0 + $0x30] sm:$0xff]  ;;  %v38_v9 = vld [vmem:[%s1463_s0 + $0x38] sm:$0xff]  ;;  %v39_v10 = vld [vmem:[%s1463_s0 + $0x40] sm:$0xff]  ;;  %s950_s27 = sshll.u32 %s1095_s26, 4  ;;  %s952_s29 = sshll.u32 %s1469_s6, 4  ;;  %s951_s27 = int_to_ptr.vmem [resolvable:$true] %s950_s27  ;;  %s953_s29 = int_to_ptr.hbm [resolvable:$true] %s952_s29 }
   0x8   :  { %v40_v11 = vld [vmem:[%s1463_s0 + $0x48] sm:$0xff]  ;;  %v41_v12 = vld [vmem:[%s1463_s0 + $0x50] sm:$0xff]  ;;  %v42_v13 = vld [vmem:[%s1463_s0 + $0x58] sm:$0xff] }
   0x9   :  { %v314_v14 = vld [vmem:[%s1466_s3 + $0x18] sm:$0xff]  ;;  %v313_v15 = vld [vmem:[%s1466_s3 + $0x10] sm:$0xff]  ;;  %v43_v16 = vld [vmem:[%s1463_s0 + $0x60] sm:$0xff] }
   0xa   :  { %428 = vmatpush.msra.mxu1 %v314_v14  ;;  %1032 = vmatpush.msra.mxu2 %v314_v14  ;;  %v312_v17 = vld [vmem:[%s1466_s3 + $0x8] sm:$0xff]  ;;  %v311_v18 = vld [vmem:[%s1466_s3] sm:$0xff]  ;;  %v49_v21 = vld [vmem:[%s1463_s0 + $0x90] sm:$0xff] }
   0xb   :  { %v48_v19 = vld [vmem:[%s1463_s0 + $0x88] sm:$0xff]  ;;  %v45_v22 = vld [vmem:[%s1463_s0 + $0x70] sm:$0xff]  ;;  %v50_v23 = vld [vmem:[%s1463_s0 + $0x98] sm:$0xff] }
   0xc   :  { %429 = vmatpush.msra.mxu1 %v313_v15  ;;  %1033 = vmatpush.msra.mxu2 %v313_v15  ;;  %v44_v20 = vld [vmem:[%s1463_s0 + $0x68] sm:$0xff]  ;;  %v46_v24 = vld [vmem:[%s1463_s0 + $0x78] sm:$0xff]  ;;  %v51_v25 = vld [vmem:[%s1463_s0 + $0xa0] sm:$0xff] }
   0xd   :  { %967 = vmatmul.msk.f32.gmra.mxu0 %vm69_vm0, %v32_v3  ;;  %983 = vmatmul.msk.f32.vlgmr.msra.gmra.mxu3 %vm69_vm0, %v48_v19  ;;  %v1232_v26 = vld [vmem:[%s1465_s2] ss:$0 sm:$0xff]  ;;  %v52_v31 = vld [vmem:[%s1463_s0 + $0xa8] sm:$0xff]  ;;  %v53_v35 = vld [vmem:[%s1463_s0 + $0xb0] sm:$0xff] }
   0xe   :  { %430 = vmatpush.msra.mxu1 %v312_v17  ;;  %1034 = vmatpush.msra.mxu2 %v312_v17  ;;  %v47_v28 = vld [vmem:[%s1463_s0 + $0x80] sm:$0xff]  ;;  %v54_v39 = vld [vmem:[%s1463_s0 + $0xb8] sm:$0xff]  ;;  %v56_v47 = vld [vmem:[%s1463_s0 + $0xc8] sm:$0xff] }
   0xf   :  { %v55_v43 = vld [vmem:[%s1463_s0 + $0xc0] sm:$0xff]  ;;  %v57_v51 = vld [vmem:[%s1463_s0 + $0xd0] sm:$0xff]  ;;  %v58_v55 = vld [vmem:[%s1463_s0 + $0xd8] sm:$0xff] }
  0x10   :  { %431 = vmatpush.msra.mxu1 %v311_v18  ;;  %1035 = vmatpush.msra.mxu2 %v311_v18  ;;  %v59_v59 = vld [vmem:[%s1463_s0 + $0xe0] sm:$0xff]  ;;  %v60_v63 = vld [vmem:[%s1463_s0 + $0xe8] sm:$0xff]  ;;  %v61_v3 = vld [vmem:[%s1463_s0 + $0xf0] sm:$0xff] }
  0x15   :  { %968 = vmatmul.msk.f32.gmra.mxu0 %vm69_vm0, %v33_v4  ;;  %984 = vmatmul.msk.f32.gmra.mxu3 %vm69_vm0, %v49_v21 }
  0x1d   :  { %969 = vmatmul.msk.f32.gmra.mxu0 %vm69_vm0, %v34_v5  ;;  %985 = vmatmul.msk.f32.gmra.mxu3 %vm69_vm0, %v50_v23 }
  0x25   :  { %970 = vmatmul.msk.f32.gmra.mxu0 %vm69_vm0, %v35_v6  ;;  %986 = vmatmul.msk.f32.gmra.mxu3 %vm69_vm0, %v51_v25 }
  0x2d   :  { %971 = vmatmul.msk.f32.gmra.mxu0 %vm69_vm0, %v36_v7  ;;  %987 = vmatmul.msk.f32.gmra.mxu3 %vm69_vm0, %v52_v31  ;;  %v62_v7 = vld [vmem:[%s1463_s0 + $0xf8] sm:$0xff]  ;;  %v1318_v31 = vld [vmem:[%s1467_s4] ss:$0 sm:$0xff]  ;;  %s1094_s4 = smov [#allocation2]  }
  0x2e   :  { %s939_s22 = sshll.u32 %s1094_s4, 4  ;;  %s940_s22 = int_to_ptr.vmem [resolvable:$true] %s939_s22 }
  0x35   :  { %972 = vmatmul.msk.f32.gmra.mxu0 %vm69_vm0, %v37_v8  ;;  %988 = vmatmul.msk.f32.gmra.mxu3 %vm69_vm0, %v53_v35 }
  0x3d   :  { %973 = vmatmul.msk.f32.gmra.mxu0 %vm69_vm0, %v38_v9  ;;  %989 = vmatmul.msk.f32.gmra.mxu3 %vm69_vm0, %v54_v39 }
  0x45   :  { %974 = vmatmul.msk.f32.gmra.mxu0 %vm69_vm0, %v39_v10  ;;  %990 = vmatmul.msk.f32.gmra.mxu3 %vm69_vm0, %v55_v43 }
  0x4d   :  { %975 = vmatmul.msk.f32.gmra.mxu0 %vm69_vm0, %v40_v11  ;;  %991 = vmatmul.msk.f32.gmra.mxu3 %vm69_vm0, %v56_v47 }
  0x55   :  { %976 = vmatmul.msk.f32.gmra.mxu0 %vm69_vm0, %v41_v12  ;;  %992 = vmatmul.msk.f32.gmra.mxu3 %vm69_vm0, %v57_v51 }
  0x5d   :  { %977 = vmatmul.msk.f32.gmra.mxu0 %vm69_vm0, %v42_v13  ;;  %993 = vmatmul.msk.f32.gmra.mxu3 %vm69_vm0, %v58_v55 }
  0x65   :  { %978 = vmatmul.msk.f32.gmra.mxu0 %vm69_vm0, %v43_v16  ;;  %994 = vmatmul.msk.f32.gmra.mxu3 %vm69_vm0, %v59_v59 }
  0x6d   :  { %979 = vmatmul.msk.f32.gmra.mxu0 %vm69_vm0, %v44_v20  ;;  %995 = vmatmul.msk.f32.gmra.mxu3 %vm69_vm0, %v60_v63 }
  0x75   :  { %980 = vmatmul.msk.f32.gmra.mxu0 %vm69_vm0, %v45_v22  ;;  %996 = vmatmul.msk.f32.gmra.mxu3 %vm69_vm0, %v61_v3 }
  0x7d   :  { %981 = vmatmul.msk.f32.gmra.mxu0 %vm69_vm0, %v46_v24  ;;  %997 = vmatmul.msk.f32.gmra.mxu3 %vm69_vm0, %v62_v7 }
  0x82   :  { %v183_v27 = vpop.f32.mrf.mxu0 }
  0x83   :  { %v184_v29 = vadd.f32 %v1232_v26, %v183_v27 }
  0x85   :  { %v279_v30 = vmax.f32 %v184_v29, 0.0  ;;  %982 = vmatmul.msk.f32.gmra.mxu0 %vm69_vm0, %v47_v28 }
  0x87   :  { %998 = vmatmul.msk.f32.vlgmr.msra.gmra.mxu1 %vm319_vm1, %v279_v30 }
  0x8a   :  { %v186_v32 = vpop.f32.mrf.mxu0 }
  0x8b   :  { %v187_v33 = vadd.f32 %v1232_v26, %v186_v32 }
  0x8d   :  { %v280_v34 = vmax.f32 %v187_v33, 0.0 }
  0x8f   :  { %999 = vmatmul.msk.f32.gmra.mxu1 %vm319_vm1, %v280_v34 }
  0x90   :  { %v234_v15 = vpop.f32.mrf.mxu3 }
  0x91   :  { %v235_v33 = vadd.f32 %v1232_v26, %v234_v15 }
  0x92   :  { %v189_v36 = vpop.f32.mrf.mxu0 }
  0x93   :  { %v190_v37 = vadd.f32 %v1232_v26, %v189_v36  ;;  %v296_v35 = vmax.f32 %v235_v33, 0.0 }
  0x95   :  { %v281_v38 = vmax.f32 %v190_v37, 0.0 }
  0x97   :  { %1000 = vmatmul.msk.f32.gmra.mxu1 %vm319_vm1, %v281_v38 }
  0x98   :  { %v237_v19 = vpop.f32.mrf.mxu3 }
  0x9a   :  { %v192_v40 = vpop.f32.mrf.mxu0 }
  0x9b   :  { %v193_v41 = vadd.f32 %v1232_v26, %v192_v40  ;;  %v238_v40 = vadd.f32 %v1232_v26, %v237_v19 }
  0x9d   :  { %v282_v42 = vmax.f32 %v193_v41, 0.0  ;;  %v297_v47 = vmax.f32 %v238_v40, 0.0 }
  0x9f   :  { %1001 = vmatmul.msk.f32.gmra.mxu1 %vm319_vm1, %v282_v42 }
  0xa0   :  { %v240_v24 = vpop.f32.mrf.mxu3 }
  0xa1   :  { %v241_v55 = vadd.f32 %v1232_v26, %v240_v24 }
  0xa2   :  { %v195_v44 = vpop.f32.mrf.mxu0 }
  0xa3   :  { %v196_v45 = vadd.f32 %v1232_v26, %v195_v44 }
  0xa5   :  { %v283_v46 = vmax.f32 %v196_v45, 0.0 }
  0xa7   :  { %1002 = vmatmul.msk.f32.gmra.mxu1 %vm319_vm1, %v283_v46 }
  0xa8   :  { %v243_v32 = vpop.f32.mrf.mxu3 }
  0xa9   :  { %v244_v3 = vadd.f32 %v1232_v26, %v243_v32 }
  0xaa   :  { %v198_v48 = vpop.f32.mrf.mxu0 }
  0xab   :  { %v199_v49 = vadd.f32 %v1232_v26, %v198_v48  ;;  %v299_v7 = vmax.f32 %v244_v3, 0.0 }
  0xad   :  { %v284_v50 = vmax.f32 %v199_v49, 0.0 }
  0xaf   :  { %1003 = vmatmul.msk.f32.gmra.mxu1 %vm319_vm1, %v284_v50 }
  0xb0   :  { %v246_v41 = vpop.f32.mrf.mxu3 }
  0xb1   :  { %v247_v15 = vadd.f32 %v1232_v26, %v246_v41 }
  0xb2   :  { %v201_v52 = vpop.f32.mrf.mxu0 }
  0xb3   :  { %v202_v53 = vadd.f32 %v1232_v26, %v201_v52  ;;  %v300_v19 = vmax.f32 %v247_v15, 0.0 }
  0xb5   :  { %v285_v54 = vmax.f32 %v202_v53, 0.0 }
  0xb7   :  { %1004 = vmatmul.msk.f32.gmra.mxu1 %vm319_vm1, %v285_v54 }
  0xba   :  { %v204_v56 = vpop.f32.mrf.mxu0 }
  0xbb   :  { %v205_v57 = vadd.f32 %v1232_v26, %v204_v56 }
  0xbd   :  { %v286_v58 = vmax.f32 %v205_v57, 0.0  ;;  %v249_v57 = vpop.f32.mrf.mxu3 }
  0xbf   :  { %1005 = vmatmul.msk.f32.gmra.mxu1 %vm319_vm1, %v286_v58 }
  0xc2   :  { %v207_v60 = vpop.f32.mrf.mxu0 }
  0xc3   :  { %v208_v61 = vadd.f32 %v1232_v26, %v207_v60  ;;  %v298_v60 = vmax.f32 %v241_v55, 0.0 }
  0xc5   :  { %v287_v62 = vmax.f32 %v208_v61, 0.0 }
  0xc7   :  { %1006 = vmatmul.msk.f32.gmra.mxu1 %vm319_vm1, %v287_v62 }
  0xca   :  { %v210_v0 = vpop.f32.mrf.mxu0 }
  0xcb   :  { %v211_v1 = vadd.f32 %v1232_v26, %v210_v0 }
  0xcd   :  { %v288_v2 = vmax.f32 %v211_v1, 0.0 }
  0xcf   :  { %1007 = vmatmul.msk.f32.gmra.mxu1 %vm319_vm1, %v288_v2 }
  0xd2   :  { %v213_v4 = vpop.f32.mrf.mxu0 }
  0xd3   :  { %v214_v5 = vadd.f32 %v1232_v26, %v213_v4 }
  0xd5   :  { %v289_v6 = vmax.f32 %v214_v5, 0.0 }
  0xd7   :  { %1008 = vmatmul.msk.f32.gmra.mxu1 %vm319_vm1, %v289_v6 }
  0xda   :  { %v216_v8 = vpop.f32.mrf.mxu0 }
  0xdb   :  { %v217_v9 = vadd.f32 %v1232_v26, %v216_v8 }
  0xdd   :  { %v290_v10 = vmax.f32 %v217_v9, 0.0 }
  0xdf   :  { %1009 = vmatmul.msk.f32.gmra.mxu1 %vm319_vm1, %v290_v10  ;;  %v252_v10 = vpop.f32.mrf.mxu3 }
  0xe2   :  { %v219_v11 = vpop.f32.mrf.mxu0 }
  0xe3   :  { %v220_v12 = vadd.f32 %v1232_v26, %v219_v11 }
  0xe5   :  { %v291_v13 = vmax.f32 %v220_v12, 0.0 }
  0xe7   :  { %1010 = vmatmul.msk.f32.gmra.mxu1 %vm319_vm1, %v291_v13  ;;  %v255_v24 = vpop.f32.mrf.mxu3 }
  0xea   :  { %v222_v14 = vpop.f32.mrf.mxu0 }
  0xeb   :  { %v223_v16 = vadd.f32 %v1232_v26, %v222_v14 }
  0xed   :  { %v292_v17 = vmax.f32 %v223_v16, 0.0 }
  0xef   :  { %1011 = vmatmul.msk.f32.gmra.mxu1 %vm319_vm1, %v292_v17 }
  0xf2   :  { %v225_v18 = vpop.f32.mrf.mxu0 }
  0xf3   :  { %v226_v20 = vadd.f32 %v1232_v26, %v225_v18 }
  0xf5   :  { %v293_v21 = vmax.f32 %v226_v20, 0.0 }
  0xf7   :  { %1012 = vmatmul.msk.f32.gmra.mxu1 %vm319_vm1, %v293_v21 }
  0xfa   :  { %v228_v22 = vpop.f32.mrf.mxu0 }
  0xfb   :  { %v229_v23 = vadd.f32 %v1232_v26, %v228_v22 }
  0xfd   :  { %v294_v25 = vmax.f32 %v229_v23, 0.0 }
  0xff   :  { %1013 = vmatmul.msk.f32.gmra.mxu1 %vm319_vm1, %v294_v25  ;;  %v250_v25 = vadd.f32 %v1232_v26, %v249_v57 }
 0x102   :  { %v231_v27 = vpop.f32.mrf.mxu0 }
 0x103   :  { %v232_v28 = vadd.f32 %v1232_v26, %v231_v27  ;;  %v301_v27 = vmax.f32 %v250_v25, 0.0 }
 0x104   :  { %v433_v29 = vpop.f32.mrf.mxu1 }
 0x105   :  { %v295_v30 = vmax.f32 %v232_v28, 0.0  ;;  %v434_v34 = vadd.f32 %v1318_v31, %v433_v29  ;;  %v253_v29 = vadd.f32 %v1232_v26, %v252_v10 }
 0x107   :  { %1014 = vmatmul.msk.f32.vlgmr.msra.gmra.mxu2 %vm319_vm1, %v295_v30  ;;  %v529_v37 = vmax.f32 %v434_v34, 0.0  ;;  %v258_v30 = vpop.f32.mrf.mxu3  ;;  %v302_v32 = vmax.f32 %v253_v29, 0.0  ;;  %v256_v34 = vadd.f32 %v1232_v26, %v255_v24 }
 0x109   :  { %v831_v42 = vmul.f32 %v529_v37, %v529_v37  ;;  %v758_v44 = vsel %vm757_vm2, %v529_v37, 0.0 }
 0x10b   :  { %v863_v50 = vsel %vm757_vm2, %v831_v42, 0.0 }
 0x10c   :  { %v436_v36 = vpop.f32.mrf.mxu1 }
 0x10d   :  { %v437_v38 = vadd.f32 %v1318_v31, %v436_v36  ;;  %v303_v36 = vmax.f32 %v256_v34, 0.0 }
 0x10f   :  { %v530_v39 = vmax.f32 %v437_v38, 0.0  ;;  %1015 = vmatmul.msk.f32.gmra.mxu2 %vm319_vm1, %v296_v35  ;;  %v261_v35 = vpop.f32.mrf.mxu3  ;;  %v259_v38 = vadd.f32 %v1232_v26, %v258_v30 }
 0x110   :  { %v262_v42 = vadd.f32 %v1232_v26, %v261_v35 }
 0x111   :  { %v725_v43 = vmul.f32 0.0, %v530_v39  ;;  %v304_v39 = vmax.f32 %v259_v38, 0.0 }
 0x113   :  { %v759_v45 = vsel %vm757_vm2, %v725_v43, 0.0  ;;  %v832_v46 = vmul.f32 %v725_v43, %v725_v43  ;;  %v305_v43 = vmax.f32 %v262_v42, 0.0 }
 0x114   :  { %v760_v48 = vadd.f32 %v759_v45, %v758_v44  ;;  %v439_v49 = vpop.f32.mrf.mxu1 }
 0x115   :  { %v864_v51 = vsel %vm757_vm2, %v832_v46, 0.0  ;;  %v440_v52 = vadd.f32 %v1318_v31, %v439_v49 }
 0x116   :  { %v865_v53 = vadd.f32 %v864_v51, %v863_v50 }
 0x117   :  { %v531_v54 = vmax.f32 %v440_v52, 0.0  ;;  %1016 = vmatmul.msk.f32.gmra.mxu2 %vm319_vm1, %v297_v47  ;;  %v264_v41 = vpop.f32.mrf.mxu3 }
 0x118   :  { %v265_v46 = vadd.f32 %v1232_v26, %v264_v41 }
 0x119   :  { %v726_v56 = vmul.f32 0.0, %v531_v54 }
 0x11a   :  { %v306_v47 = vmax.f32 %v265_v46, 0.0 }
 0x11b   :  { %v761_v58 = vsel %vm757_vm2, %v726_v56, 0.0  ;;  %v833_v59 = vmul.f32 %v726_v56, %v726_v56 }
 0x11c   :  { %v762_v61 = vadd.f32 %v761_v58, %v760_v48  ;;  %v442_v62 = vpop.f32.mrf.mxu1 }
 0x11d   :  { %v866_v63 = vsel %vm757_vm2, %v833_v59, 0.0  ;;  %v443_v0 = vadd.f32 %v1318_v31, %v442_v62 }
 0x11e   :  { %v867_v1 = vadd.f32 %v866_v63, %v865_v53 }
 0x11f   :  { %v532_v2 = vmax.f32 %v443_v0, 0.0  ;;  %1017 = vmatmul.msk.f32.gmra.mxu2 %vm319_vm1, %v298_v60  ;;  %v267_v45 = vpop.f32.mrf.mxu3 }
 0x120   :  { %v268_v49 = vadd.f32 %v1232_v26, %v267_v45 }
 0x121   :  { %v727_v4 = vmul.f32 0.0, %v532_v2 }
 0x122   :  { %v307_v51 = vmax.f32 %v268_v49, 0.0 }
 0x123   :  { %v763_v5 = vsel %vm757_vm2, %v727_v4, 0.0  ;;  %v834_v6 = vmul.f32 %v727_v4, %v727_v4 }
 0x124   :  { %v764_v8 = vadd.f32 %v763_v5, %v762_v61  ;;  %v445_v9 = vpop.f32.mrf.mxu1 }
 0x125   :  { %v868_v11 = vsel %vm757_vm2, %v834_v6, 0.0  ;;  %v446_v12 = vadd.f32 %v1318_v31, %v445_v9 }
 0x126   :  { %v869_v13 = vadd.f32 %v868_v11, %v867_v1 }
 0x127   :  { %v533_v14 = vmax.f32 %v446_v12, 0.0  ;;  %1018 = vmatmul.msk.f32.gmra.mxu2 %vm319_vm1, %v299_v7  ;;  %v270_v50 = vpop.f32.mrf.mxu3 }
 0x128   :  { %v271_v53 = vadd.f32 %v1232_v26, %v270_v50 }
 0x129   :  { %v728_v16 = vmul.f32 0.0, %v533_v14 }
 0x12a   :  { %v308_v56 = vmax.f32 %v271_v53, 0.0 }
 0x12b   :  { %v765_v17 = vsel %vm757_vm2, %v728_v16, 0.0  ;;  %v835_v18 = vmul.f32 %v728_v16, %v728_v16 }
 0x12c   :  { %v1344_v20 = vadd.f32 %v765_v17, %v764_v8  ;;  %v448_v21 = vpop.f32.mrf.mxu1 }
 0x12d   :  { %v870_v22 = vsel %vm757_vm2, %v835_v18, 0.0  ;;  %v449_v54 = vadd.f32 %v1318_v31, %v448_v21 }
 0x12e   :  { %v1347_v23 = vadd.f32 %v870_v22, %v869_v13 }
 0x12f   :  { %1019 = vmatmul.msk.f32.gmra.mxu2 %vm319_vm1, %v300_v19  ;;  %v273_v55 = vpop.f32.mrf.mxu3  ;;  %v534_v59 = vmax.f32 %v449_v54, 0.0 }
 0x130   :  { %v274_v61 = vadd.f32 %v1232_v26, %v273_v55 }
 0x131   :  { %v729_v0 = vmul.f32 0.0, %v534_v59 }
 0x132   :  { %v309_v3 = vmax.f32 %v274_v61, 0.0 }
 0x133   :  { %v836_v9 = vmul.f32 %v729_v0, %v729_v0  ;;  %v767_v16 = vsel %vm757_vm2, %v729_v0, 0.0 }
 0x134   :  { %v451_v28 = vpop.f32.mrf.mxu1  ;;  %v768_v29 = vadd.f32 %v767_v16, %v1344_v20 }
 0x135   :  { %v452_v57 = vadd.f32 %v1318_v31, %v451_v28  ;;  %v872_v19 = vsel %vm757_vm2, %v836_v9, 0.0 }
 0x137   :  { %1020 = vmatmul.msk.f32.gmra.mxu2 %vm319_vm1, %v301_v27  ;;  %v535_v62 = vmax.f32 %v452_v57, 0.0  ;;  %v276_v7 = vpop.f32.mrf.mxu3 }
 0x138   :  { %v277_v13 = vadd.f32 %v1232_v26, %v276_v7 }
 0x139   :  { %v730_v4 = vmul.f32 0.0, %v535_v62 }
 0x13a   :  { %v310_v28 = vmax.f32 %v277_v13, 0.0 }
 0x13b   :  { %v837_v14 = vmul.f32 %v730_v4, %v730_v4  ;;  %v769_v24 = vsel %vm757_vm2, %v730_v4, 0.0 }
 0x13c   :  { %v454_v33 = vpop.f32.mrf.mxu1  ;;  %v770_v38 = vadd.f32 %v769_v24, %v768_v29 }
 0x13d   :  { %v455_v60 = vadd.f32 %v1318_v31, %v454_v33  ;;  %v874_v26 = vsel %vm757_vm2, %v837_v14, 0.0 }
 0x13f   :  { %1021 = vmatmul.msk.f32.gmra.mxu2 %vm319_vm1, %v302_v32  ;;  %v536_v1 = vmax.f32 %v455_v60, 0.0 }
 0x141   :  { %v731_v10 = vmul.f32 0.0, %v536_v1 }
 0x143   :  { %v838_v21 = vmul.f32 %v731_v10, %v731_v10  ;;  %v771_v33 = vsel %vm757_vm2, %v731_v10, 0.0 }
 0x144   :  { %v457_v37 = vpop.f32.mrf.mxu1  ;;  %v772_v45 = vadd.f32 %v771_v33, %v770_v38 }
 0x145   :  { %v458_v63 = vadd.f32 %v1318_v31, %v457_v37  ;;  %v873_v37 = vadd.f32 %v872_v19, %v1347_v23 }
 0x147   :  { %1022 = vmatmul.msk.f32.gmra.mxu2 %vm319_vm1, %v303_v36  ;;  %v537_v5 = vmax.f32 %v458_v63, 0.0 }
 0x149   :  { %v732_v15 = vmul.f32 0.0, %v537_v5 }
 0x14b   :  { %v839_v30 = vmul.f32 %v732_v15, %v732_v15  ;;  %v773_v41 = vsel %vm757_vm2, %v732_v15, 0.0 }
 0x14c   :  { %v460_v40 = vpop.f32.mrf.mxu1 }
 0x14d   :  { %v461_v2 = vadd.f32 %v1318_v31, %v460_v40  ;;  %v878_v46 = vsel %vm757_vm2, %v839_v30, 0.0 }
 0x14f   :  { %1023 = vmatmul.msk.f32.gmra.mxu2 %vm319_vm1, %v304_v39  ;;  %v538_v11 = vmax.f32 %v461_v2, 0.0  ;;  %v876_v39 = vsel %vm757_vm2, %v838_v21, 0.0 }
 0x151   :  { %v733_v22 = vmul.f32 0.0, %v538_v11 }
 0x153   :  { %v840_v40 = vmul.f32 %v733_v22, %v733_v22 }
 0x154   :  { %v463_v44 = vpop.f32.mrf.mxu1 }
 0x155   :  { %v464_v8 = vadd.f32 %v1318_v31, %v463_v44  ;;  %v875_v44 = vadd.f32 %v874_v26, %v873_v37 }
 0x157   :  { %1024 = vmatmul.msk.f32.gmra.mxu2 %vm319_vm1, %v305_v43  ;;  %v539_v17 = vmax.f32 %v464_v8, 0.0  ;;  %v877_v50 = vadd.f32 %v876_v39, %v875_v44 }
 0x159   :  { %v734_v34 = vmul.f32 0.0, %v539_v17  ;;  %v879_v57 = vadd.f32 %v878_v46, %v877_v50 }
 0x15b   :  { %v777_v53 = vsel %vm757_vm2, %v734_v34, 0.0 }
 0x15c   :  { %v466_v48 = vpop.f32.mrf.mxu1 }
 0x15d   :  { %v467_v12 = vadd.f32 %v1318_v31, %v466_v48  ;;  %v841_v48 = vmul.f32 %v734_v34, %v734_v34 }
 0x15f   :  { %1025 = vmatmul.msk.f32.gmra.mxu2 %vm319_vm1, %v306_v47  ;;  %v540_v25 = vmax.f32 %v467_v12, 0.0  ;;  %v775_v47 = vsel %vm757_vm2, %v733_v22, 0.0  ;;  %v882_v59 = vsel %vm757_vm2, %v841_v48, 0.0 }
 0x161   :  { %v735_v42 = vmul.f32 0.0, %v540_v25 }
 0x163   :  { %v842_v54 = vmul.f32 %v735_v42, %v735_v42  ;;  %v779_v60 = vsel %vm757_vm2, %v735_v42, 0.0 }
 0x164   :  { %v469_v52 = vpop.f32.mrf.mxu1 }
 0x165   :  { %v470_v18 = vadd.f32 %v1318_v31, %v469_v52  ;;  %v880_v52 = vsel %vm757_vm2, %v840_v40, 0.0  ;;  %v884_v1 = vsel %vm757_vm2, %v842_v54, 0.0 }
 0x166   :  { %v881_v63 = vadd.f32 %v880_v52, %v879_v57 }
 0x167   :  { %1026 = vmatmul.msk.f32.gmra.mxu2 %vm319_vm1, %v307_v51  ;;  %v541_v35 = vmax.f32 %v470_v18, 0.0  ;;  %v774_v51 = vadd.f32 %v773_v41, %v772_v45 }
 0x168   :  { %v883_v5 = vadd.f32 %v882_v59, %v881_v63 }
 0x169   :  { %v736_v23 = vmul.f32 0.0, %v541_v35 }
 0x16a   :  { %v885_v10 = vadd.f32 %v884_v1, %v883_v5 }
 0x16b   :  { %v843_v61 = vmul.f32 %v736_v23, %v736_v23  ;;  %v781_v2 = vsel %vm757_vm2, %v736_v23, 0.0 }
 0x16c   :  { %v472_v58 = vpop.f32.mrf.mxu1 }
 0x16d   :  { %v473_v27 = vadd.f32 %v1318_v31, %v472_v58  ;;  %v776_v58 = vadd.f32 %v775_v47, %v774_v51  ;;  %v886_v7 = vsel %vm757_vm2, %v843_v61, 0.0 }
 0x16e   :  { %v887_v17 = vadd.f32 %v886_v7, %v885_v10 }
 0x16f   :  { %1027 = vmatmul.msk.f32.gmra.mxu2 %vm319_vm1, %v308_v56  ;;  %v542_v20 = vmax.f32 %v473_v27, 0.0  ;;  %v778_v0 = vadd.f32 %v777_v53, %v776_v58 }
 0x171   :  { %v737_v55 = vmul.f32 0.0, %v542_v20 }
 0x173   :  { %v783_v8 = vsel %vm757_vm2, %v737_v55, 0.0 }
 0x174   :  { %v475_v6 = vpop.f32.mrf.mxu1 }
 0x175   :  { %v476_v36 = vadd.f32 %v1318_v31, %v475_v6  ;;  %v780_v6 = vadd.f32 %v779_v60, %v778_v0 }
 0x177   :  { %1028 = vmatmul.msk.f32.gmra.mxu2 %vm319_vm1, %v309_v3  ;;  %v543_v49 = vmax.f32 %v476_v36, 0.0  ;;  %v844_v3 = vmul.f32 %v737_v55, %v737_v55  ;;  %v782_v11 = vadd.f32 %v781_v2, %v780_v6 }
 0x179   :  { %v738_v62 = vmul.f32 0.0, %v543_v49  ;;  %v888_v13 = vsel %vm757_vm2, %v844_v3, 0.0  ;;  %v784_v18 = vadd.f32 %v783_v8, %v782_v11 }
 0x17a   :  { %v889_v24 = vadd.f32 %v888_v13, %v887_v17 }
 0x17b   :  { %v845_v9 = vmul.f32 %v738_v62, %v738_v62  ;;  %v785_v14 = vsel %vm757_vm2, %v738_v62, 0.0 }
 0x17c   :  { %v478_v32 = vpop.f32.mrf.mxu1  ;;  %v786_v25 = vadd.f32 %v785_v14, %v784_v18 }
 0x17d   :  { %v479_v43 = vadd.f32 %v1318_v31, %v478_v32  ;;  %v890_v19 = vsel %vm757_vm2, %v845_v9, 0.0 }
 0x17e   :  { %v891_v29 = vadd.f32 %v890_v19, %v889_v24 }
 0x17f   :  { %1029 = vmatmul.msk.f32.gmra.mxu2 %vm319_vm1, %v310_v28  ;;  %v544_v56 = vmax.f32 %v479_v43, 0.0 }
 0x181   :  { %v739_v4 = vmul.f32 0.0, %v544_v56 }
 0x183   :  { %v846_v15 = vmul.f32 %v739_v4, %v739_v4  ;;  %v787_v21 = vsel %vm757_vm2, %v739_v4, 0.0 }
 0x184   :  { %v788_v26 = vadd.f32 %v787_v21, %v786_v25 }
 0x185   :  { %v892_v27 = vsel %vm757_vm2, %v846_v15, 0.0 }
 0x186   :  { %v893_v33 = vadd.f32 %v892_v27, %v891_v29 }
 0x18a   :  { %v481_v12 = vpop.f32.mrf.mxu2 }
 0x18b   :  { %v482_v16 = vadd.f32 %v1318_v31, %v481_v12 }
 0x18d   :  { %v545_v22 = vmax.f32 %v482_v16, 0.0 }
 0x18f   :  { %v740_v28 = vmul.f32 0.0, %v545_v22 }
 0x191   :  { %v789_v30 = vsel %vm757_vm2, %v740_v28, 0.0  ;;  %v847_v32 = vmul.f32 %v740_v28, %v740_v28 }
 0x192   :  { %v790_v34 = vadd.f32 %v789_v30, %v788_v26  ;;  %v484_v35 = vpop.f32.mrf.mxu2 }
 0x193   :  { %v894_v36 = vsel %vm757_vm2, %v847_v32, 0.0  ;;  %v485_v37 = vadd.f32 %v1318_v31, %v484_v35  ;;  %v1093_v32 = vmov 0.0  }
 0x194   :  { %v895_v38 = vadd.f32 %v894_v36, %v893_v33  ;;  %29 = vst.msk [vmem:[#allocation2] sm:$0x1] %vm28_vm3, %v1093_v32 }
 0x195   :  { %v546_v39 = vmax.f32 %v485_v37, 0.0  ;;  %30 = vst.msk [vmem:[#allocation4] sm:$0x1] %vm28_vm3, %v1093_v32 }
 0x197   :  { %v741_v40 = vmul.f32 0.0, %v546_v39 }
 0x199   :  { %v791_v41 = vsel %vm757_vm2, %v741_v40, 0.0  ;;  %v848_v42 = vmul.f32 %v741_v40, %v741_v40 }
 0x19a   :  { %v792_v20 = vadd.f32 %v791_v41, %v790_v34  ;;  %v487_v43 = vpop.f32.mrf.mxu2 }
 0x19b   :  { %v896_v44 = vsel %vm757_vm2, %v848_v42, 0.0  ;;  %v488_v45 = vadd.f32 %v1318_v31, %v487_v43 }
 0x19c   :  { %v897_v46 = vadd.f32 %v896_v44, %v895_v38 }
 0x19d   :  { %v547_v47 = vmax.f32 %v488_v45, 0.0 }
 0x19f   :  { %v742_v48 = vmul.f32 0.0, %v547_v47 }
 0x1a1   :  { %v793_v23 = vsel %vm757_vm2, %v742_v48, 0.0  ;;  %v849_v49 = vmul.f32 %v742_v48, %v742_v48 }
 0x1a2   :  { %v794_v50 = vadd.f32 %v793_v23, %v792_v20  ;;  %v490_v51 = vpop.f32.mrf.mxu2 }
 0x1a3   :  { %v898_v52 = vsel %vm757_vm2, %v849_v49, 0.0  ;;  %v491_v53 = vadd.f32 %v1318_v31, %v490_v51 }
 0x1a4   :  { %v899_v54 = vadd.f32 %v898_v52, %v897_v46 }
 0x1a5   :  { %v548_v55 = vmax.f32 %v491_v53, 0.0 }
 0x1a7   :  { %v743_v56 = vmul.f32 0.0, %v548_v55 }
 0x1a9   :  { %v795_v57 = vsel %vm757_vm2, %v743_v56, 0.0  ;;  %v850_v58 = vmul.f32 %v743_v56, %v743_v56 }
 0x1aa   :  { %v796_v59 = vadd.f32 %v795_v57, %v794_v50  ;;  %v493_v60 = vpop.f32.mrf.mxu2 }
 0x1ab   :  { %v900_v61 = vsel %vm757_vm2, %v850_v58, 0.0  ;;  %v494_v62 = vadd.f32 %v1318_v31, %v493_v60 }
 0x1ac   :  { %v901_v63 = vadd.f32 %v900_v61, %v899_v54 }
 0x1ad   :  { %v549_v0 = vmax.f32 %v494_v62, 0.0 }
 0x1af   :  { %v744_v1 = vmul.f32 0.0, %v549_v0 }
 0x1b1   :  { %v797_v2 = vsel %vm757_vm2, %v744_v1, 0.0  ;;  %v851_v3 = vmul.f32 %v744_v1, %v744_v1 }
 0x1b2   :  { %v798_v4 = vadd.f32 %v797_v2, %v796_v59  ;;  %v496_v5 = vpop.f32.mrf.mxu2 }
 0x1b3   :  { %v902_v6 = vsel %vm757_vm2, %v851_v3, 0.0  ;;  %v497_v14 = vadd.f32 %v1318_v31, %v496_v5 }
 0x1b4   :  { %v903_v7 = vadd.f32 %v902_v6, %v901_v63 }
 0x1b5   :  { %v550_v16 = vmax.f32 %v497_v14, 0.0 }
 0x1b7   :  { %v745_v22 = vmul.f32 0.0, %v550_v16 }
 0x1b9   :  { %v852_v26 = vmul.f32 %v745_v22, %v745_v22  ;;  %v799_v37 = vsel %vm757_vm2, %v745_v22, 0.0 }
 0x1ba   :  { %v499_v8 = vpop.f32.mrf.mxu2  ;;  %v800_v46 = vadd.f32 %v799_v37, %v798_v4 }
 0x1bb   :  { %v500_v15 = vadd.f32 %v1318_v31, %v499_v8  ;;  %v904_v41 = vsel %vm757_vm2, %v852_v26, 0.0 }
 0x1bc   :  { %v905_v51 = vadd.f32 %v904_v41, %v903_v7 }
 0x1bd   :  { %v551_v21 = vmax.f32 %v500_v15, 0.0 }
 0x1bf   :  { %v746_v28 = vmul.f32 0.0, %v551_v21 }
 0x1c1   :  { %v853_v38 = vmul.f32 %v746_v28, %v746_v28  ;;  %v801_v20 = vsel %vm757_vm2, %v746_v28, 0.0 }
 0x1c2   :  { %v502_v9 = vpop.f32.mrf.mxu2  ;;  %v802_v52 = vadd.f32 %v801_v20, %v800_v46 }
 0x1c3   :  { %v503_v17 = vadd.f32 %v1318_v31, %v502_v9  ;;  %v906_v48 = vsel %vm757_vm2, %v853_v38, 0.0 }
 0x1c4   :  { %v907_v58 = vadd.f32 %v906_v48, %v905_v51 }
 0x1c5   :  { %v552_v25 = vmax.f32 %v503_v17, 0.0 }
 0x1c7   :  { %v747_v33 = vmul.f32 0.0, %v552_v25 }
 0x1c9   :  { %v854_v43 = vmul.f32 %v747_v33, %v747_v33  ;;  %v803_v23 = vsel %vm757_vm2, %v747_v33, 0.0 }
 0x1ca   :  { %v505_v10 = vpop.f32.mrf.mxu2  ;;  %v804_v59 = vadd.f32 %v803_v23, %v802_v52 }
 0x1cb   :  { %v506_v18 = vadd.f32 %v1318_v31, %v505_v10  ;;  %v908_v54 = vsel %vm757_vm2, %v854_v43, 0.0 }
 0x1cc   :  { %v909_v2 = vadd.f32 %v908_v54, %v907_v58 }
 0x1cd   :  { %v553_v27 = vmax.f32 %v506_v18, 0.0 }
 0x1cf   :  { %v748_v35 = vmul.f32 0.0, %v553_v27 }
 0x1d1   :  { %v855_v47 = vmul.f32 %v748_v35, %v748_v35  ;;  %v805_v55 = vsel %vm757_vm2, %v748_v35, 0.0 }
 0x1d2   :  { %v508_v11 = vpop.f32.mrf.mxu2  ;;  %v806_v3 = vadd.f32 %v805_v55, %v804_v59 }
 0x1d3   :  { %v509_v24 = vadd.f32 %v1318_v31, %v508_v11  ;;  %v910_v60 = vsel %vm757_vm2, %v855_v47, 0.0 }
 0x1d4   :  { %v911_v9 = vadd.f32 %v910_v60, %v909_v2 }
 0x1d5   :  { %v554_v30 = vmax.f32 %v509_v24, 0.0 }
 0x1d7   :  { %v749_v42 = vmul.f32 0.0, %v554_v30 }
 0x1d9   :  { %v856_v53 = vmul.f32 %v749_v42, %v749_v42  ;;  %v807_v62 = vsel %vm757_vm2, %v749_v42, 0.0 }
 0x1da   :  { %v511_v12 = vpop.f32.mrf.mxu2  ;;  %v808_v10 = vadd.f32 %v807_v62, %v806_v3 }
 0x1db   :  { %v512_v29 = vadd.f32 %v1318_v31, %v511_v12  ;;  %v912_v4 = vsel %vm757_vm2, %v856_v53, 0.0  ;;  %v756_v53 = vld [vmem:[#allocation2] sm:$0x1] }
 0x1dc   :  { %v913_v15 = vadd.f32 %v912_v4, %v911_v9 }
 0x1dd   :  { %v555_v39 = vmax.f32 %v512_v29, 0.0 }
 0x1df   :  { %v750_v49 = vmul.f32 0.0, %v555_v39 }
 0x1e1   :  { %v857_v63 = vmul.f32 %v750_v49, %v750_v49  ;;  %v809_v5 = vsel %vm757_vm2, %v750_v49, 0.0 }
 0x1e2   :  { %v514_v13 = vpop.f32.mrf.mxu2  ;;  %v810_v16 = vadd.f32 %v809_v5, %v808_v10 }
 0x1e3   :  { %v515_v34 = vadd.f32 %v1318_v31, %v514_v13  ;;  %v914_v11 = vsel %vm757_vm2, %v857_v63, 0.0 }
 0x1e4   :  { %v915_v21 = vadd.f32 %v914_v11, %v913_v15 }
 0x1e5   :  { %v556_v44 = vmax.f32 %v515_v34, 0.0 }
 0x1e7   :  { %v751_v56 = vmul.f32 0.0, %v556_v44 }
 0x1e9   :  { %v858_v6 = vmul.f32 %v751_v56, %v751_v56  ;;  %v811_v12 = vsel %vm757_vm2, %v751_v56, 0.0  ;;  %v830_v56 = vld [vmem:[#allocation4] sm:$0x1] }
 0x1ea   :  { %v517_v19 = vpop.f32.mrf.mxu2  ;;  %v812_v22 = vadd.f32 %v811_v12, %v810_v16 }
 0x1eb   :  { %v518_v40 = vadd.f32 %v1318_v31, %v517_v19  ;;  %v916_v17 = vsel %vm757_vm2, %v858_v6, 0.0 }
 0x1ec   :  { %v917_v26 = vadd.f32 %v916_v17, %v915_v21 }
 0x1ed   :  { %v557_v50 = vmax.f32 %v518_v40, 0.0 }
 0x1ef   :  { %v752_v0 = vmul.f32 0.0, %v557_v50 }
 0x1f1   :  { %v859_v13 = vmul.f32 %v752_v0, %v752_v0  ;;  %v813_v18 = vsel %vm757_vm2, %v752_v0, 0.0 }
 0x1f2   :  { %v520_v36 = vpop.f32.mrf.mxu2  ;;  %v814_v30 = vadd.f32 %v813_v18, %v812_v22 }
 0x1f3   :  { %v521_v45 = vadd.f32 %v1318_v31, %v520_v36  ;;  %v918_v25 = vsel %vm757_vm2, %v859_v13, 0.0 }
 0x1f4   :  { %v919_v35 = vadd.f32 %v918_v25, %v917_v26 }
 0x1f5   :  { %v558_v57 = vmax.f32 %v521_v45, 0.0 }
 0x1f7   :  { %v753_v7 = vmul.f32 0.0, %v558_v57 }
 0x1f9   :  { %v860_v19 = vmul.f32 %v753_v7, %v753_v7  ;;  %v815_v27 = vsel %vm757_vm2, %v753_v7, 0.0 }
 0x1fa   :  { %v523_v61 = vpop.f32.mrf.mxu2  ;;  %v816_v36 = vadd.f32 %v815_v27, %v814_v30 }
 0x1fb   :  { %v524_v1 = vadd.f32 %v1318_v31, %v523_v61  ;;  %v920_v32 = vsel %vm757_vm2, %v860_v19, 0.0 }
 0x1fc   :  { %v921_v39 = vadd.f32 %v920_v32, %v919_v35 }
 0x1fd   :  { %v559_v8 = vmax.f32 %v524_v1, 0.0 }
 0x1ff   :  { %v754_v14 = vmul.f32 0.0, %v559_v8 }
 0x201   :  { %v861_v28 = vmul.f32 %v754_v14, %v754_v14  ;;  %v817_v33 = vsel %vm757_vm2, %v754_v14, 0.0 }
 0x202   :  { %v526_v24 = vpop.f32.mrf.mxu2  ;;  %v818_v40 = vadd.f32 %v817_v33, %v816_v36 }
 0x203   :  { %v527_v29 = vadd.f32 %v1318_v31, %v526_v24  ;;  %v922_v37 = vsel %vm757_vm2, %v861_v28, 0.0 }
 0x204   :  { %v923_v20 = vadd.f32 %v922_v37, %v921_v39 }
 0x205   :  { %v560_v34 = vmax.f32 %v527_v29, 0.0 }
 0x207   :  { %v755_v38 = vmul.f32 0.0, %v560_v34 }
 0x209   :  { %v819_v41 = vsel %vm757_vm2, %v755_v38, 0.0  ;;  %v862_v42 = vmul.f32 %v755_v38, %v755_v38 }
 0x20a   :  { %v820_v43 = vadd.f32 %v819_v41, %v818_v40 }
 0x20b   :  { %v924_v31 = vsel %vm757_vm2, %v862_v42, 0.0 }
 0x20c   :  { %v821_v44 = vrot.slane %v820_v43, 4  ;;  %v925_v45 = vadd.f32 %v924_v31, %v923_v20 }
 0x20e   :  { %v822_v46 = vadd.f32 %v821_v44, %v820_v43  ;;  %v926_v47 = vrot.slane %v925_v45, 4 }
 0x210   :  { %v823_v48 = vrot.slane %v822_v46, 2  ;;  %v927_v23 = vadd.f32 %v926_v47, %v925_v45 }
 0x212   :  { %v824_v49 = vadd.f32 %v823_v48, %v822_v46  ;;  %v928_v50 = vrot.slane %v927_v23, 2 }
 0x214   :  { %v825_v51 = vrot.slane %v824_v49, 1  ;;  %v929_v52 = vadd.f32 %v928_v50, %v927_v23 }
 0x216   :  { %v826_v54 = vadd.f32 %v825_v51, %v824_v49  ;;  %v930_v55 = vrot.slane %v929_v52, 1 }
 0x218   :  { %v827_v57 = vadd.f32 %v826_v54, %v756_v53  ;;  %v931_v58 = vadd.f32 %v930_v55, %v929_v52 }
 0x21a   :  { %829 = vst.msk [vmem:[#allocation2] sm:$0x1] %vm28_vm3, %v827_v57  ;;  %v932_v59 = vadd.f32 %v931_v58, %v830_v56 }
 0x21b   :  { %944 = dma.vmem_to_hbm [thread:$0]  %s940_s22, 16, %s942_s25, [#allocation3]  }
 0x21c   :  { %933 = vst.msk [vmem:[#allocation4] sm:$0x1] %vm28_vm3, %v932_v59 }
 0x21d   :  { %955 = dma.vmem_to_hbm [thread:$0]  %s951_s27, 16, %s953_s29, [#allocation5]  }
 0x21e   :  { %1089 = dma.done.wait [#allocation3], 16  }
 0x21f   :  { %1090 = vsyncadd [#allocation3], 4294967280 }
 0x220   :  { %1091 = dma.done.wait [#allocation5], 16  }
 0x221   :  { %1092 = vsyncadd [#allocation5], 4294967280 }
 0x222   :  { %964 = vsyncpa [#allocation3], 1 }
 0x223   :  { %965 = vsyncpa [#allocation5], 1 }

</bundles_post_ra>
